<compile_context>
chip_gen: v6e
topology: v6e:2x2x1
jax: 0.10.0
libtpu: 0.0.40
codegen_flags: <defaults>
</compile_context>

<pallas_src>
import functools

import jax
import jax.numpy as jnp
from jax.experimental import pallas as pl
from jax.experimental.pallas import tpu as pltpu


def _pick_tile(dim, candidates):
    """Largest candidate that evenly divides `dim`, else the full dim."""
    for c in candidates:
        if dim % c == 0:
            return c
    return dim


# ----------------------------------------------------------------------------
# Kernel 1: forward(v) = param_net(v) = v @ W + b   (tiled MXU matmul)
# ----------------------------------------------------------------------------
def _forward_kernel(v_ref, w_ref, b_ref, o_ref, acc_ref):
    @pl.when(pl.program_id(2) == 0)
    def _():
        acc_ref[...] = jnp.zeros_like(acc_ref)

    # TODO(synk): cast v/W to bf16 here (keep f32 accumulation) if the model
    # tolerates it — 2-4x MXU throughput on v6e/v7x.
    acc_ref[...] += jnp.dot(v_ref[...], w_ref[...],
                            preferred_element_type=jnp.float32)

    @pl.when(pl.program_id(2) == pl.num_programs(2) - 1)
    def _():
        o_ref[...] = (acc_ref[...] + b_ref[...]).astype(o_ref.dtype)


def forward(v, w, b):
    """param_net forward: logits = v @ W + b  (the module's forward())."""
    B, V = v.shape
    H = w.shape[1]
    # 128-multiple tiles when shapes allow (production), full dims otherwise
    # (small test shapes).  Tile sizes stay well under v7x's 64 MiB VMEM.
    tm = _pick_tile(B, (256, 128))
    tn = _pick_tile(H, (512, 256, 128))
    tk = _pick_tile(V, (512, 256, 128))
    return pl.pallas_call(
        _forward_kernel,
        out_shape=jax.ShapeDtypeStruct((B, H), jnp.float32),
        grid=(B // tm, H // tn, V // tk),
        in_specs=[
            pl.BlockSpec((tm, tk), lambda i, j, k: (i, k)),
            pl.BlockSpec((tk, tn), lambda i, j, k: (k, j)),
            pl.BlockSpec((1, tn), lambda i, j, k: (0, j)),
        ],
        out_specs=pl.BlockSpec((tm, tn), lambda i, j, k: (i, j)),
        scratch_shapes=[pltpu.VMEM((tm, tn), jnp.float32)],
        compiler_params=pltpu.CompilerParams(
            dimension_semantics=("parallel", "parallel", "arbitrary")),
    )(v, w, b)


# ----------------------------------------------------------------------------
# Kernel 2: implicit_net reparameterization (matmul hoisted out, done once)
#
#   logits2 = stack([logits, 0], -1); log_pi = log_softmax(logits2, -1)
#   h = softmax((log_pi + eps) / T, -1)[..., 0]
#     = sigmoid(((log_pi0 + eps0) - (log_pi1 + eps1)) / T)
#     = sigmoid((logits + eps0 - eps1) * (1/T))     since log_pi0-log_pi1==logits
# ----------------------------------------------------------------------------
def _implicit_kernel(logits_ref, eps0_ref, eps1_ref, h_ref, *, inv_temperature):
    logits = logits_ref[...]                                  # (B, H), resident
    z = (logits[None] + (eps0_ref[...] - eps1_ref[...])) * inv_temperature
    h_ref[...] = jax.nn.sigmoid(z).astype(h_ref.dtype)


def _choose_p_block(P, B, H, budget_bytes=8 << 20):
    """Particles per grid step: 3 f32 streams (eps0, eps1, h) double-buffered."""
    per_particle = 3 * 2 * B * H * 4
    p_blk = max(1, min(P, budget_bytes // max(per_particle, 1)))
    while P % p_blk:
        p_blk -= 1
    return p_blk


def implicit_net(logits, eps_packed, temperature):
    """Bernoulli reparameterization (implicit_net).

    Args:
      logits:     (B, H) f32 from `forward` (computed once, shared by all p).
      eps_packed: (2, P, B, H) standard-Gumbel samples.
    Returns:
      h: (P, B, H)
    """
    _, P, B, H = eps_packed.shape
    eps0 = eps_packed[0]        # contiguous leading-axis slices -> no copies
    eps1 = eps_packed[1]
    p_blk = _choose_p_block(P, B, H)

    kernel = functools.partial(_implicit_kernel,
                               inv_temperature=float(1.0 / temperature))
    return pl.pallas_call(
        kernel,
        out_shape=jax.ShapeDtypeStruct((P, B, H), jnp.float32),
        grid=(P // p_blk,),
        in_specs=[
            pl.BlockSpec((B, H), lambda p: (0, 0)),             # stays resident
            pl.BlockSpec((p_blk, B, H), lambda p: (p, 0, 0)),
            pl.BlockSpec((p_blk, B, H), lambda p: (p, 0, 0)),
        ],
        out_specs=pl.BlockSpec((p_blk, B, H), lambda p: (p, 0, 0)),
        compiler_params=pltpu.CompilerParams(
            # particle axis has no cross-step dependence -> shard across TCs
            dimension_semantics=("parallel",)),
    )(logits, eps0, eps1)


# ----------------------------------------------------------------------------
# Glue / reference pieces in plain JAX
# ----------------------------------------------------------------------------
def sample_gumbel(key, shape, infinitesimal=1e-20):
    u = jax.random.uniform(key, shape, dtype=jnp.float32)
    return -jnp.log(-jnp.log(u + infinitesimal) + infinitesimal)


def reference_implicit(v, w, b, eps_last, temperature):
    """Direct transcription of the PyTorch reference (eps_last: (P, B, H, 2))."""
    logits = v @ w + b
    logits2 = jnp.stack([logits, jnp.zeros_like(logits)], axis=-1)
    log_pi = jax.nn.log_softmax(logits2, axis=-1)
    return jax.nn.softmax((log_pi[None] + eps_last) / temperature, axis=-1)[..., 0]


# TODO(synk): log_q / implicit_net_log_q depend on external `func.log_bernoulli`
# whose definition is not provided; not implemented here.

if __name__ == "__main__":
    B, V, H, P = 2, 16, 32, 4
    temperature = 0.1

    key = jax.random.PRNGKey(0)
    k_v, k_w, k_b, k_eps = jax.random.split(key, 4)

    # Deterministic synthetic parameters for param_net (Linear: V -> H).
    v = jax.random.normal(k_v, (B, V), dtype=jnp.float32)
    w = jax.random.normal(k_w, (V, H), dtype=jnp.float32) * 0.1
    b = jax.random.normal(k_b, (1, H), dtype=jnp.float32) * 0.1

    # forward() -> logits (param_net matmul, run ONCE, shared by all particles)
    logits = forward(v, w, b)
    jax.block_until_ready(logits)

    # expect() = sigmoid(forward(v))  (elementwise glue in plain JAX)
    expect = jax.nn.sigmoid(logits)

    # implicit_net(): Gumbel noise generated as (2, P, B, H) so the kernel gets
    # two contiguous streams; fused elementwise reparameterization kernel.
    eps_packed = sample_gumbel(k_eps, (2, P, B, H))
    h = implicit_net(logits, eps_packed, temperature)
    jax.block_until_ready(h)

    # sanity check against plain-JAX reference (PyTorch eps layout (P, B, H, 2))
    eps_last = jnp.moveaxis(eps_packed, 0, -1)
    ref_logits = v @ w + b
    ref_h = reference_implicit(v, w, b, eps_last, temperature)
    assert jnp.allclose(logits, ref_logits, atol=1e-4, rtol=1e-4)
    assert jnp.allclose(h, ref_h, atol=1e-4, rtol=1e-4)
    assert h.shape == (P, B, H)
    assert expect.shape == (B, H)

    print("KERNEL_OK")
</pallas_src>

<mosaic_0001>
module attributes {stable_mosaic.version = 11 : i64} {
  func.func @_forward_kernel(%arg0: i32, %arg1: i32, %arg2: i32, %arg3: memref<2x16xf32, #tpu.memory_space<vmem>>, %arg4: memref<16x32xf32, #tpu.memory_space<vmem>>, %arg5: memref<1x32xf32, #tpu.memory_space<vmem>>, %arg6: memref<2x32xf32, #tpu.memory_space<vmem>>, %arg7: memref<2x32xf32, #tpu.memory_space<vmem>>) attributes {dimension_semantics = [#tpu.dimension_semantics<parallel>, #tpu.dimension_semantics<parallel>, #tpu.dimension_semantics<arbitrary>], iteration_bounds = array<i64: 1, 1, 1>, scalar_prefetch = 0 : i64, scratch_operands = 1 : i64, tpu.core_type = #tpu.core_type<tc>, window_params = [{transform_indices = @transform_0, window_bounds = array<i64: 2, 16>}, {transform_indices = @transform_1, window_bounds = array<i64: 16, 32>}, {transform_indices = @transform_2, window_bounds = array<i64: 1, 32>}, {transform_indices = @transform_3, window_bounds = array<i64: 2, 32>}]} {
    %c0_i32 = arith.constant 0 : i32
    %0 = arith.cmpi eq, %arg2, %c0_i32 : i32
    %1 = arith.extui %0 : i1 to i32
    %c0_i32_0 = arith.constant 0 : i32
    %2 = arith.cmpi ne, %1, %c0_i32_0 : i32
    scf.if %2 {
      %cst_10 = arith.constant 0.000000e+00 : f32
      %12 = vector.broadcast %cst_10 : f32 to vector<2x32xf32>
      %c0_11 = arith.constant 0 : index
      %c0_12 = arith.constant 0 : index
      %13 = vector.load %arg7[%c0_11, %c0_12] : memref<2x32xf32, #tpu.memory_space<vmem>>, vector<2x32xf32>
      tpu.vector_store %arg7[%c0_11, %c0_12], %12 {strides = array<i32>} : memref<2x32xf32, #tpu.memory_space<vmem>>, vector<2x32xf32>,
    } else {
    }
    %c0 = arith.constant 0 : index
    %c0_1 = arith.constant 0 : index
    %3 = vector.load %arg7[%c0, %c0_1] : memref<2x32xf32, #tpu.memory_space<vmem>>, vector<2x32xf32>
    %c0_2 = arith.constant 0 : index
    %c0_3 = arith.constant 0 : index
    %4 = vector.load %arg3[%c0_2, %c0_3] : memref<2x16xf32, #tpu.memory_space<vmem>>, vector<2x16xf32>
    %c0_4 = arith.constant 0 : index
    %c0_5 = arith.constant 0 : index
    %5 = vector.load %arg4[%c0_4, %c0_5] : memref<16x32xf32, #tpu.memory_space<vmem>>, vector<16x32xf32>
    %cst = arith.constant dense<0.000000e+00> : vector<2x32xf32>
    %6 = tpu.matmul %4, %5, %cst {dimension_numbers = #tpu.dot_dimension_numbers<[1], [0], [0], [1], [0, 0, 1, 1], [], []>} : vector<2x16xf32>, vector<16x32xf32>, vector<2x32xf32> -> vector<2x32xf32>
    %7 = arith.addf %3, %6 : vector<2x32xf32>
    %c0_6 = arith.constant 0 : index
    %c0_7 = arith.constant 0 : index
    %8 = vector.load %arg7[%c0_6, %c0_7] : memref<2x32xf32, #tpu.memory_space<vmem>>, vector<2x32xf32>
    tpu.vector_store %arg7[%c0_6, %c0_7], %7 {strides = array<i32>} : memref<2x32xf32, #tpu.memory_space<vmem>>, vector<2x32xf32>,
    %c0_i32_8 = arith.constant 0 : i32
    %9 = arith.cmpi eq, %arg2, %c0_i32_8 : i32
    %10 = arith.extui %9 : i1 to i32
    %c0_i32_9 = arith.constant 0 : i32
    %11 = arith.cmpi ne, %10, %c0_i32_9 : i32
    scf.if %11 {
      %c0_10 = arith.constant 0 : index
      %c0_11 = arith.constant 0 : index
      %12 = vector.load %arg7[%c0_10, %c0_11] : memref<2x32xf32, #tpu.memory_space<vmem>>, vector<2x32xf32>
      %c0_12 = arith.constant 0 : index
      %c0_13 = arith.constant 0 : index
      %13 = vector.load %arg5[%c0_12, %c0_13] : memref<1x32xf32, #tpu.memory_space<vmem>>, vector<1x32xf32>
      %14 = vector.broadcast %13 : vector<1x32xf32> to vector<2x32xf32>
      %15 = arith.addf %12, %14 : vector<2x32xf32>
      %c0_14 = arith.constant 0 : index
      %c0_15 = arith.constant 0 : index
      %16 = vector.load %arg6[%c0_14, %c0_15] : memref<2x32xf32, #tpu.memory_space<vmem>>, vector<2x32xf32>
      tpu.vector_store %arg6[%c0_14, %c0_15], %15 {strides = array<i32>} : memref<2x32xf32, #tpu.memory_space<vmem>>, vector<2x32xf32>,
    } else {
    }
    return
  }
  func.func @transform_0(%arg0: i32, %arg1: i32, %arg2: i32) -> (i32, i32) {
    %c0_i32 = arith.constant 0 : i32
    return %arg0, %arg2 : i32, i32
  }
  func.func @transform_1(%arg0: i32, %arg1: i32, %arg2: i32) -> (i32, i32) {
    %c0_i32 = arith.constant 0 : i32
    return %arg2, %arg1 : i32, i32
  }
  func.func @transform_2(%arg0: i32, %arg1: i32, %arg2: i32) -> (i32, i32) {
    %c0_i32 = arith.constant 0 : i32
    %c0_i32_0 = arith.constant 0 : i32
    return %c0_i32, %arg1 : i32, i32
  }
  func.func @transform_3(%arg0: i32, %arg1: i32, %arg2: i32) -> (i32, i32) {
    %c0_i32 = arith.constant 0 : i32
    return %arg0, %arg1 : i32, i32
  }
}

</mosaic_0001>

<bundles_post_ra>
// kernel: tpu_custom_call.1
= control target key start
LH: loop header
LB: loop body
LE: loop exit
PB: predicated region body
PF: predicated region fallthrough
CT: control target
= control target key end

     0   :  { %8 = vsyncpa [#allocation4], 0  ;;  %s284_s0 = inlined_call_operand.hbm [shape: f32[2,16], index: 0, kind: input, shape index: {}]   ;;  %s285_s1 = inlined_call_operand.hbm [shape: f32[16,32], index: 1, kind: input, shape index: {}]   ;;  %s286_s2 = inlined_call_operand.vmem [shape: f32[1,32], index: 2, kind: input, shape index: {}]   ;;  %s287_s3 = inlined_call_operand.hbm [shape: f32[2,32], index: 3, kind: output, shape index: {}]  }
   0x1   :  { %9 = vsyncpa [#allocation7], 0 }
   0x2   :  { %10 = vsyncpa [#allocation5], 0  ;;  %s242_s12 = smov [#allocation3]   ;;  %s243_s14 = smov [#allocation6]  }
   0x3   :  { %s17_s13 = sshll.u32 %s242_s12, 4  ;;  %s26_s15 = sshll.u32 %s243_s14, 4  ;;  %s18_s13 = int_to_ptr.vmem [resolvable:$true] %s17_s13  ;;  %s27_s15 = int_to_ptr.vmem [resolvable:$true] %s26_s15 }
   0x4   :  { %s184_s16 = scalar_lea.vmem %s18_s13, 32  ;;  %p189_p1 = scmp.lt.s32.totalorder %s18_s13, %s18_s13 }
   0x5   :  { %p185_p0 = scmp.ne.s32.totalorder %s18_s13, %s184_s16  ;;  %p190_p2 = scmp.lt.s32.totalorder %s184_s16, %s184_s16 }
   0x7   :  { %p191_p3 = por %p190_p2, %p189_p1 }
   0x9   :  { %p192_p4 = pnand %p191_p3, %p185_p0 }
   0xb   :  { %195 = shalt.err (!%p192_p4)
}
   0xc   :  { %20 = dma.hbm_to_vmem [thread:$0]  %s284_s0, 32, %s18_s13, [#allocation4]  }
   0xd   :  { %s204_s19 = scalar_lea.vmem %s27_s15, 256  ;;  %p209_p6 = scmp.lt.s32.totalorder %s27_s15, %s27_s15 }
   0xe   :  { %p205_p5 = scmp.ne.s32.totalorder %s27_s15, %s204_s19  ;;  %p210_p7 = scmp.lt.s32.totalorder %s204_s19, %s204_s19 }
  0x10   :  { %p211_p8 = por %p210_p7, %p209_p6 }
  0x12   :  { %p212_p9 = pnand %p211_p8, %p205_p5 }
  0x14   :  { %215 = shalt.err (!%p212_p9)
}
  0x15   :  { %s244_s20 = smov 128   ;;  %s245_s21 = smov 8  }
  0x16   :  { %32 = dma.hbm_to_vmem [thread:$0]  %s285_s1, 256, %s27_s15, [#allocation7], %s244_s20, %s244_s20, %s245_s21  }
  0x17   :  { %236 = dma.done.wait [#allocation4], 32  }
  0x18   :  { %237 = vsyncadd [#allocation4], 4294967264 }
  0x19   :  { %238 = dma.done.wait [#allocation7], 256  }
  0x1a   :  { %239 = vsyncadd [#allocation7], 4294967040  ;;  %vm45_vm0 = vcmask 254976   ;;  %v246_v0 = vmov 0.0   ;;  %vm247_vm1 = vmmov 0   ;;  %v50_v1 = vld [vmem:[#allocation6 + $0x8] sm:$0xff] }
  0x1b   :  { %162 = vmatprep.subr.mxu0 %v246_v0  ;;  %166 = vmatprep.mubr.msk.f32.mxu0 %vm247_vm1, %v246_v0  ;;  %46 = vst.msk [vmem:[#allocation2] sm:$0x3] %vm45_vm0, %v246_v0  ;;  %v49_v2 = vld [vmem:[#allocation6] sm:$0xff]  ;;  %v48_v3 = vld [vmem:[#allocation3] sm:$0x3]  ;;  %vm51_vm2 = vcmask 130048  }
  0x1c   :  { %163 = vmatpush3.msra.mxu0 %v50_v1  ;;  %v158_v8 = vld [vmem:[%s286_s2] ss:$0 sm:$0xff]  ;;  %s248_s24 = smov [#allocation8]  }
  0x1d   :  { %164 = vmatprep.subr.mxu0 %v246_v0  ;;  %s147_s25 = sshll.u32 %s248_s24, 4  ;;  %s148_s25 = int_to_ptr.vmem [resolvable:$true] %s147_s25 }
  0x1e   :  { %165 = vmatpush3.msra.mxu0 %v49_v2  ;;  %s216_s26 = scalar_lea.vmem %s148_s25, 32  ;;  %p221_p11 = scmp.lt.s32.totalorder %s148_s25, %s148_s25 }
  0x1f   :  { %167 = vmatmul.mubr.msk.f32.vlgmr.msra.gmra.mxu0 %vm51_vm2, %v48_v3  ;;  %p217_p10 = scmp.ne.s32.totalorder %s148_s25, %s216_s26  ;;  %p222_p12 = scmp.lt.s32.totalorder %s216_s26, %s216_s26 }
  0x21   :  { %p223_p13 = por %p222_p12, %p221_p11 }
  0x22   :  { %v47_v4 = vld [vmem:[#allocation2] sm:$0x3] }
  0x23   :  { %p224_p0 = pnand %p223_p13, %p217_p10 }
  0xdf   :  { %v121_v5 = vpop.f32.mrf.mxu0 }
  0xe0   :  { %v125_v6 = vadd.f32 %v121_v5, %v47_v4 }
  0xe1   :  { %v168_v7 = vpop.f32.mrf.mxu0 }
  0xe2   :  { %127 = vst.msk [vmem:[#allocation2] sm:$0x3] %vm45_vm0, %v125_v6 }
  0xe9   :  { %v131_v9 = vld [vmem:[#allocation2] sm:$0x3] }
  0xea   :  { %v139_v10 = vadd.f32 %v158_v8, %v131_v9 }
  0xec   :  { %140 = vst.msk [vmem:[#allocation8] sm:$0x3] %vm45_vm0, %v139_v10 }
  0xed   :  { %227 = shalt.err (!%p224_p0)
}
  0xee   :  { %150 = dma.vmem_to_hbm [thread:$0]  %s148_s25, 32, %s287_s3, [#allocation5]  }
  0xef   :  { %240 = dma.done.wait [#allocation5], 32  }
  0xf0   :  { %241 = vsyncadd [#allocation5], 4294967264 }
  0xf1   :  { %154 = vsyncpa [#allocation4], 1 }
  0xf2   :  { %155 = vsyncpa [#allocation7], 1 }
  0xf3   :  { %156 = vsyncpa [#allocation5], 1 }

</bundles_post_ra>
